<compile_context>
chip_gen: v5e
topology: v5e:2x2
jax: 0.10.0
libtpu: 0.0.40
codegen_flags: <defaults>
</compile_context>

<pallas_src>
import jax
import jax.numpy as jnp
from jax.experimental import pallas as pl
from jax.experimental.pallas import tpu as pltpu

HIDDEN1 = 60
HIDDEN2 = 45
H1P = 128   # padded lane width of hidden layer 1 (60 -> 128)
H2P = 128   # padded lane width of hidden layer 2 (45 -> 128)


def _row_offsets(obs_size, act_size):
    """Static row layout of the packed parameter slab (columns = 128)."""
    o_w1 = 0                       # (obs_size, 128)  W1, cols [0:60)
    o_b1 = o_w1 + obs_size         # (1, 128)         b1, cols [0:60)
    o_w2o = o_b1 + 1               # (128, 128)       W2 obs-part, [0:60)x[0:45)
    o_w2a = o_w2o + H1P            # (act_size, 128)  W2 act-part, cols [0:45)
    o_b2 = o_w2a + act_size        # (1, 128)         b2, cols [0:45)
    o_w3 = o_b2 + 1                # (1, 128)         w3 row, cols [0:45)
    o_b3 = o_w3 + 1                # (1, 128)         b3 in lane 0
    rows = o_b3 + 1
    rows_padded = ((rows + 7) // 8) * 8   # keep sublane dim a multiple of 8
    return dict(w1=o_w1, b1=o_b1, w2o=o_w2o, w2a=o_w2a, b2=o_b2,
                w3=o_w3, b3=o_b3, rows=rows_padded)


def _make_kernel(obs_size, act_size, matmul_dtype):
    off = _row_offsets(obs_size, act_size)

    def kernel(x_ref, act_ref, slab_ref, out_ref):
        x = x_ref[...].astype(matmul_dtype)          # (TM, obs)
        a = act_ref[...].astype(matmul_dtype)        # (TM, act)

        # Static slices into the resident parameter slab (one DMA for all params).
        w1 = slab_ref[off['w1']:off['b1'], :].astype(matmul_dtype)    # (obs, 128)
        b1 = slab_ref[off['b1']:off['w2o'], :]                        # (1, 128)
        w2o = slab_ref[off['w2o']:off['w2a'], :].astype(matmul_dtype) # (128, 128)
        w2a = slab_ref[off['w2a']:off['b2'], :].astype(matmul_dtype)  # (act, 128)
        b2 = slab_ref[off['b2']:off['w3'], :]                         # (1, 128)
        w3 = slab_ref[off['w3']:off['b3'], :]                         # (1, 128)
        b3 = slab_ref[off['b3']:off['b3'] + 1, :][:, 0:1]             # (1, 1)

        # Layer 1: Linear(obs_size, 60) + ReLU  (padded lanes stay exactly 0)
        h1 = jnp.dot(x, w1, preferred_element_type=jnp.float32) + b1
        h1 = jnp.maximum(h1, 0.0)

        # Layer 2: Linear(60 + act_size, 45) + ReLU, concat folded into 2 matmuls
        h2 = (jnp.dot(h1.astype(matmul_dtype), w2o,
                      preferred_element_type=jnp.float32)
              + jnp.dot(a, w2a, preferred_element_type=jnp.float32)
              + b2)
        h2 = jnp.maximum(h2, 0.0)

        # Layer 3: Linear(45, 1) as VPU multiply + XLU lane reduction (no MXU).
        out_ref[...] = jnp.sum(h2 * w3, axis=-1, keepdims=True) + b3

    return kernel


def critic_forward(x, act, slab, *, block_rows=512, matmul_dtype=jnp.float32):
    """x: (B, obs_size) f32, act: (B, act_size) f32 -> (B, 1) f32."""
    B, obs_size = x.shape
    _, act_size = act.shape

    tm = B if B <= block_rows else block_rows   # batch tile (multiple of 8 or == B)
    grid = (pl.cdiv(B, tm),)

    kernel = _make_kernel(obs_size, act_size, matmul_dtype)

    return pl.pallas_call(
        kernel,
        out_shape=jax.ShapeDtypeStruct((B, 1), jnp.float32),
        grid=grid,
        in_specs=[
            pl.BlockSpec((tm, obs_size), lambda i: (i, 0)),   # x, streamed
            pl.BlockSpec((tm, act_size), lambda i: (i, 0)),   # act, streamed
            pl.BlockSpec(slab.shape, lambda i: (0, 0)),       # params, resident
        ],
        out_specs=pl.BlockSpec((tm, 1), lambda i: (i, 0)),
        compiler_params=pltpu.CompilerParams(
            dimension_semantics=("parallel",)),               # megacore on v7x
    )(x, act, slab)


def init_params(key, obs_size, act_size):
    """Torch-nn.Linear-style init (uniform +-1/sqrt(fan_in)); weights (in,out)."""
    ks = jax.random.split(key, 6)

    def lin(kw, kb, fan_in, fan_out):
        bound = 1.0 / float(fan_in) ** 0.5
        w = jax.random.uniform(kw, (fan_in, fan_out), jnp.float32, -bound, bound)
        b = jax.random.uniform(kb, (fan_out,), jnp.float32, -bound, bound)
        return w, b

    w1, b1 = lin(ks[0], ks[1], obs_size, HIDDEN1)
    w2, b2 = lin(ks[2], ks[3], HIDDEN1 + act_size, HIDDEN2)
    w3, b3 = lin(ks[4], ks[5], HIDDEN2, 1)
    return dict(w1=w1, b1=b1, w2=w2, b2=b2, w3=w3, b3=b3)


def pack_params(params, obs_size, act_size):
    """Pack all params into a single lane-padded (rows, 128) f32 slab."""
    off = _row_offsets(obs_size, act_size)
    slab = jnp.zeros((off['rows'], H2P), jnp.float32)

    w2o = params['w2'][:HIDDEN1, :]
    w2a = params['w2'][HIDDEN1:, :]

    slab = slab.at[off['w1']:off['w1'] + obs_size, :HIDDEN1].set(params['w1'])
    slab = slab.at[off['b1'], :HIDDEN1].set(params['b1'])
    slab = slab.at[off['w2o']:off['w2o'] + HIDDEN1, :HIDDEN2].set(w2o)
    slab = slab.at[off['w2a']:off['w2a'] + obs_size - obs_size + w2a.shape[0],
                   :HIDDEN2].set(w2a)
    slab = slab.at[off['b2'], :HIDDEN2].set(params['b2'])
    slab = slab.at[off['w3'], :HIDDEN2].set(params['w3'][:, 0])
    slab = slab.at[off['b3'], 0].set(params['b3'][0])
    return slab


def critic_ref(x, act, params):
    """Pure-JAX reference matching the PyTorch forward."""
    h1 = jnp.maximum(x @ params['w1'] + params['b1'], 0.0)
    cat = jnp.concatenate([h1, act], axis=1)
    h2 = jnp.maximum(cat @ params['w2'] + params['b2'], 0.0)
    return h2 @ params['w3'] + params['b3']


if __name__ == "__main__":
    B, OBS, ACT = 8, 16, 6
    key = jax.random.PRNGKey(0)
    kx, ka, kp = jax.random.split(key, 3)

    x = jax.random.normal(kx, (B, OBS), jnp.float32)
    act = jax.random.normal(ka, (B, ACT), jnp.float32)
    params = init_params(kp, OBS, ACT)
    slab = pack_params(params, OBS, ACT)

    out = jax.block_until_ready(critic_forward(x, act, slab))

    ref = critic_ref(x, act, params)
    assert out.shape == (B, 1)
    assert jnp.allclose(out, ref, atol=1e-5, rtol=1e-5)

    print("KERNEL_OK")
</pallas_src>

<mosaic_0001>
module attributes {stable_mosaic.version = 11 : i64} {
  func.func @kernel(%arg0: i32, %arg1: memref<8x16xf32, #tpu.memory_space<vmem>>, %arg2: memref<8x6xf32, #tpu.memory_space<vmem>>, %arg3: memref<160x128xf32, #tpu.memory_space<vmem>>, %arg4: memref<8x1xf32, #tpu.memory_space<vmem>>) attributes {dimension_semantics = [#tpu.dimension_semantics<parallel>], iteration_bounds = array<i64: 1>, scalar_prefetch = 0 : i64, scratch_operands = 0 : i64, tpu.core_type = #tpu.core_type<tc>, window_params = [{transform_indices = @transform_0, window_bounds = array<i64: 8, 16>}, {transform_indices = @transform_1, window_bounds = array<i64: 8, 6>}, {pipeline_mode = #tpu.pipeline_mode<synchronous>, transform_indices = @transform_2, window_bounds = array<i64: 160, 128>}, {transform_indices = @transform_3, window_bounds = array<i64: 8, 1>}]} {
    %c0 = arith.constant 0 : index
    %c0_0 = arith.constant 0 : index
    %0 = vector.load %arg1[%c0, %c0_0] : memref<8x16xf32, #tpu.memory_space<vmem>>, vector<8x16xf32>
    %c0_1 = arith.constant 0 : index
    %c0_2 = arith.constant 0 : index
    %1 = vector.load %arg2[%c0_1, %c0_2] : memref<8x6xf32, #tpu.memory_space<vmem>>, vector<8x6xf32>
    %c0_3 = arith.constant 0 : index
    %c0_4 = arith.constant 0 : index
    %2 = vector.load %arg3[%c0_3, %c0_4] : memref<160x128xf32, #tpu.memory_space<vmem>>, vector<16x128xf32>
    %c16 = arith.constant 16 : index
    %c0_5 = arith.constant 0 : index
    %3 = vector.load %arg3[%c16, %c0_5] : memref<160x128xf32, #tpu.memory_space<vmem>>, vector<1x128xf32>
    %c17 = arith.constant 17 : index
    %c0_6 = arith.constant 0 : index
    %4 = vector.load %arg3[%c17, %c0_6] : memref<160x128xf32, #tpu.memory_space<vmem>>, vector<128x128xf32>
    %c145 = arith.constant 145 : index
    %c0_7 = arith.constant 0 : index
    %5 = vector.load %arg3[%c145, %c0_7] : memref<160x128xf32, #tpu.memory_space<vmem>>, vector<6x128xf32>
    %c151 = arith.constant 151 : index
    %c0_8 = arith.constant 0 : index
    %6 = vector.load %arg3[%c151, %c0_8] : memref<160x128xf32, #tpu.memory_space<vmem>>, vector<1x128xf32>
    %c152 = arith.constant 152 : index
    %c0_9 = arith.constant 0 : index
    %7 = vector.load %arg3[%c152, %c0_9] : memref<160x128xf32, #tpu.memory_space<vmem>>, vector<1x128xf32>
    %c153 = arith.constant 153 : index
    %c0_10 = arith.constant 0 : index
    %8 = vector.load %arg3[%c153, %c0_10] : memref<160x128xf32, #tpu.memory_space<vmem>>, vector<1x128xf32>
    %9 = vector.extract_strided_slice %8 {offsets = [0, 0], sizes = [1, 1], strides = [1, 1]} : vector<1x128xf32> to vector<1x1xf32>
    %cst = arith.constant dense<0.000000e+00> : vector<8x128xf32>
    %10 = tpu.matmul %0, %2, %cst {dimension_numbers = #tpu.dot_dimension_numbers<[1], [0], [0], [1], [0, 0, 1, 1], [], []>} : vector<8x16xf32>, vector<16x128xf32>, vector<8x128xf32> -> vector<8x128xf32>
    %11 = vector.broadcast %3 : vector<1x128xf32> to vector<8x128xf32>
    %12 = arith.addf %10, %11 : vector<8x128xf32>
    %cst_11 = arith.constant 0.000000e+00 : f32
    %13 = vector.broadcast %cst_11 : f32 to vector<8x128xf32>
    %14 = arith.maximumf %12, %13 : vector<8x128xf32>
    %cst_12 = arith.constant dense<0.000000e+00> : vector<8x128xf32>
    %15 = tpu.matmul %14, %4, %cst_12 {dimension_numbers = #tpu.dot_dimension_numbers<[1], [0], [0], [1], [0, 0, 1, 1], [], []>} : vector<8x128xf32>, vector<128x128xf32>, vector<8x128xf32> -> vector<8x128xf32>
    %cst_13 = arith.constant dense<0.000000e+00> : vector<8x128xf32>
    %16 = tpu.matmul %1, %5, %cst_13 {dimension_numbers = #tpu.dot_dimension_numbers<[1], [0], [0], [1], [0, 0, 1, 1], [], []>} : vector<8x6xf32>, vector<6x128xf32>, vector<8x128xf32> -> vector<8x128xf32>
    %17 = arith.addf %15, %16 : vector<8x128xf32>
    %18 = vector.broadcast %6 : vector<1x128xf32> to vector<8x128xf32>
    %19 = arith.addf %17, %18 : vector<8x128xf32>
    %cst_14 = arith.constant 0.000000e+00 : f32
    %20 = vector.broadcast %cst_14 : f32 to vector<8x128xf32>
    %21 = arith.maximumf %19, %20 : vector<8x128xf32>
    %22 = vector.broadcast %7 : vector<1x128xf32> to vector<8x128xf32>
    %23 = arith.mulf %21, %22 : vector<8x128xf32>
    %cst_15 = arith.constant dense<0.000000e+00> : vector<8xf32>
    %24 = vector.multi_reduction <add>, %23, %cst_15 [1] : vector<8x128xf32> to vector<8xf32>
    %25 = vector.shape_cast %24 : vector<8xf32> to vector<8x1xf32>
    %26 = vector.broadcast %9 : vector<1x1xf32> to vector<8x1xf32>
    %27 = arith.addf %25, %26 : vector<8x1xf32>
    %c0_16 = arith.constant 0 : index
    %c0_17 = arith.constant 0 : index
    %28 = vector.load %arg4[%c0_16, %c0_17] : memref<8x1xf32, #tpu.memory_space<vmem>>, vector<8x1xf32>
    tpu.vector_store %arg4[%c0_16, %c0_17], %27 {strides = array<i32>} : memref<8x1xf32, #tpu.memory_space<vmem>>, vector<8x1xf32>,
    return
  }
  func.func @transform_0(%arg0: i32) -> (i32, i32) {
    %c0_i32 = arith.constant 0 : i32
    %c0_i32_0 = arith.constant 0 : i32
    return %arg0, %c0_i32 : i32, i32
  }
  func.func @transform_1(%arg0: i32) -> (i32, i32) {
    %c0_i32 = arith.constant 0 : i32
    %c0_i32_0 = arith.constant 0 : i32
    return %arg0, %c0_i32 : i32, i32
  }
  func.func @transform_2(%arg0: i32) -> (i32, i32) {
    %c0_i32 = arith.constant 0 : i32
    %c0_i32_0 = arith.constant 0 : i32
    %c0_i32_1 = arith.constant 0 : i32
    return %c0_i32, %c0_i32_0 : i32, i32
  }
  func.func @transform_3(%arg0: i32) -> (i32, i32) {
    %c0_i32 = arith.constant 0 : i32
    %c0_i32_0 = arith.constant 0 : i32
    return %arg0, %c0_i32 : i32, i32
  }
}

</mosaic_0001>

<bundles_post_ra>
// kernel: tpu_custom_call.1
= control target key start
LH: loop header
LB: loop body
LE: loop exit
PB: predicated region body
PF: predicated region fallthrough
CT: control target
= control target key end

     0   :  { %8 = vsyncpa [#allocation3], 0  ;;  %s298_s0 = inlined_call_operand.hbm [shape: f32[8,16], index: 0, kind: input, shape index: {}]   ;;  %s299_s1 = inlined_call_operand.hbm [shape: f32[8,6], index: 1, kind: input, shape index: {}]   ;;  %s300_s2 = inlined_call_operand.hbm [shape: f32[160,128], index: 2, kind: input, shape index: {}]   ;;  %s301_s3 = inlined_call_operand.vmem [shape: f32[8,1], index: 3, kind: output, shape index: {}]  }
   0x1   :  { %9 = vsyncpa [#allocation5], 0  ;;  %s26_s14 = sshll.u32 %s299_s1, 4  ;;  %s261_s15 = smov [#allocation4]   ;;  %s27_s14 = int_to_ptr.hbm [resolvable:$true] %s26_s14 }
   0x2   :  { %s28_s16 = sshll.u32 %s261_s15, 4  ;;  %s15_s19 = sshll.u32 %s298_s0, 4  ;;  %s29_s16 = int_to_ptr.vmem [resolvable:$true] %s28_s16  ;;  %s16_s19 = int_to_ptr.hbm [resolvable:$true] %s15_s19 }
   0x3   :  { %31 = dma.hbm_to_vmem [thread:$0]  %s27_s14, 128, %s29_s16, [#allocation5]  }
   0x4   :  { %s262_s20 = smov [#allocation2]   ;;  %s36_s24 = sshll.u32 %s300_s2, 4  ;;  %s37_s24 = int_to_ptr.hbm [resolvable:$true] %s36_s24 }
   0x5   :  { %s17_s21 = sshll.u32 %s262_s20, 4  ;;  %s263_s1 = smov [#allocation6]   ;;  %s18_s21 = int_to_ptr.vmem [resolvable:$true] %s17_s21 }
   0x6   :  { %20 = dma.hbm_to_vmem [thread:$0]  %s16_s19, 128, %s18_s21, [#allocation3]  }
   0x7   :  { %s38_s25 = sshll.u32 %s263_s1, 4  ;;  %s264_s26 = smov 128   ;;  %s39_s25 = int_to_ptr.vmem [resolvable:$true] %s38_s25 }
   0x8   :  { %s265_s27 = smov 8  }
   0x9   :  { %44 = dma.hbm_to_vmem [thread:$0]  %s37_s24, 2560, %s39_s25, [#allocation5], %s264_s26, %s264_s26, %s265_s27  }
   0xa   :  { %257 = dma.done.wait [#allocation3], 128  }
   0xb   :  { %258 = vsyncadd [#allocation3], 4294967168 }
   0xc   :  { %259 = dma.done.wait [#allocation5], 2688  }
   0xd   :  { %260 = vsyncadd [#allocation5], 4294964608  ;;  %v60_v0 = vld [vmem:[#allocation6 + $0x8] sm:$0xff]  ;;  %v59_v1 = vld [vmem:[#allocation6] sm:$0xff]  ;;  %vm83_vm0 = vcmask 130048   ;;  %vm112_vm1 = vcmask 1045504  }
   0xe   :  { %101 = vmatpush.msra.mxu0 %v60_v0  ;;  %v57_v2 = vld [vmem:[#allocation2] sm:$0xff]  ;;  %v76_v4 = vld [vmem:[#allocation6 + $0x81] sm:$0xff]  ;;  %v75_v5 = vld [vmem:[#allocation6 + $0x79] sm:$0xff]  ;;  %vm108_vm2 = vcmask 48128   ;;  %vm165_vm3 = vcmask 7168  }
   0xf   :  { %v77_v3 = vld [vmem:[#allocation6 + $0x89] sm:$0xff]  ;;  %v74_v6 = vld [vmem:[#allocation6 + $0x71] sm:$0xff]  ;;  %v72_v8 = vld [vmem:[#allocation6 + $0x61] sm:$0xff] }
  0x10   :  { %136 = vmatpush.msra.mxu2 %v77_v3  ;;  %102 = vmatpush.msra.mxu0 %v59_v1  ;;  %v73_v7 = vld [vmem:[#allocation6 + $0x69] sm:$0xff]  ;;  %v71_v9 = vld [vmem:[#allocation6 + $0x59] sm:$0xff]  ;;  %v70_v10 = vld [vmem:[#allocation6 + $0x51] sm:$0xff] }
  0x11   :  { %173 = vmatmul.msk.f32.vlgmr.msra.gmra.mxu0 %vm83_vm0, %v57_v2  ;;  %v69_v11 = vld [vmem:[#allocation6 + $0x49] sm:$0xff]  ;;  %v68_v12 = vld [vmem:[#allocation6 + $0x41] sm:$0xff]  ;;  %v67_v13 = vld [vmem:[#allocation6 + $0x39] sm:$0xff] }
  0x12   :  { %137 = vmatpush.msra.mxu2 %v76_v4  ;;  %v66_v14 = vld [vmem:[#allocation6 + $0x31] sm:$0xff]  ;;  %v65_v15 = vld [vmem:[#allocation6 + $0x29] sm:$0xff]  ;;  %v64_v16 = vld [vmem:[#allocation6 + $0x21] sm:$0xff] }
  0x13   :  { %v63_v17 = vld [vmem:[#allocation6 + $0x19] sm:$0xff]  ;;  %v62_v18 = vld [vmem:[#allocation6 + $0x11] sm:$0xff]  ;;  %v181_v21 = vld [vmem:[#allocation6 + $0x10] ss:$0 sm:$0xff] }
  0x14   :  { %138 = vmatpush.msra.mxu2 %v75_v5  ;;  %v78_v19 = vld [vmem:[#allocation6 + $0x91] sm:$0x3f]  ;;  %v58_v20 = vld [vmem:[#allocation4] sm:$0xff]  ;;  %v182_v26 = vld [vmem:[#allocation6 + $0x97] ss:$0 sm:$0xff] }
  0x15   :  { %174 = vmatpush.msk.msra.mxu1 %vm112_vm1, %v78_v19  ;;  %v183_v30 = vld [vmem:[#allocation6 + $0x98] ss:$0 sm:$0xff]  ;;  %v184_v33 = vld [vmem:[#allocation6 + $0x99] ss:$0 sm:$0xff] }
  0x16   :  { %139 = vmatpush.msra.mxu2 %v74_v6  ;;  %175 = vmatmul.msk.f32.vlgmr.msra.gmra.mxu1 %vm108_vm2, %v58_v20 }
  0x18   :  { %140 = vmatpush.msra.mxu2 %v73_v7 }
  0x1a   :  { %141 = vmatpush.msra.mxu2 %v72_v8 }
  0x1c   :  { %142 = vmatpush.msra.mxu2 %v71_v9 }
  0x1e   :  { %143 = vmatpush.msra.mxu2 %v70_v10 }
  0x20   :  { %144 = vmatpush.msra.mxu2 %v69_v11 }
  0x22   :  { %145 = vmatpush.msra.mxu2 %v68_v12 }
  0x24   :  { %146 = vmatpush.msra.mxu2 %v67_v13 }
  0x26   :  { %147 = vmatpush.msra.mxu2 %v66_v14 }
  0x28   :  { %148 = vmatpush.msra.mxu2 %v65_v15 }
  0x2a   :  { %149 = vmatpush.msra.mxu2 %v64_v16 }
  0x2c   :  { %150 = vmatpush.msra.mxu2 %v63_v17 }
  0x2e   :  { %151 = vmatpush.msra.mxu2 %v62_v18 }
  0x8e   :  { %v104_v22 = vpop.f32.mrf.mxu0 }
  0x8f   :  { %v105_v23 = vadd.f32 %v181_v21, %v104_v22 }
  0x91   :  { %v107_v24 = vmax.f32 %v105_v23, 0.0 }
  0x93   :  { %152 = vmatmul.f32.vlgmr.msra.gmra.mxu2 %v107_v24  ;;  %v133_v25 = vpop.f32.mrf.mxu1 }
 0x116   :  { %v153_v27 = vpop.f32.mrf.mxu2 }
 0x117   :  { %v154_v28 = vadd.f32 %v153_v27, %v133_v25 }
 0x119   :  { %v157_v29 = vadd.f32 %v182_v26, %v154_v28 }
 0x11b   :  { %v158_v31 = vmax.f32 %v157_v29, 0.0 }
 0x11d   :  { %v160_v32 = vmul.f32 %v183_v30, %v158_v31 }
 0x11f   :  { %161 = vadd.xlane.f32.xlu0 %v160_v32 }
 0x192   :  { %v162_v34 = vpop.xlane.xlu0 %161 }
 0x193   :  { %v164_v35 = vadd.f32 %v184_v33, %v162_v34 }
 0x195   :  { %166 = vst.msk [vmem:[%s301_s3] sm:$0xff] %vm165_vm3, %v164_v35 }
 0x196   :  { %171 = vsyncpa [#allocation3], 1 }
 0x197   :  { %172 = vsyncpa [#allocation5], 1 }

</bundles_post_ra>
